<compile_context>
chip_gen: v7x
topology: tpu7x:2x2x1
jax: 0.10.0
libtpu: 0.0.40
codegen_flags: <defaults>
</compile_context>

<pallas_src>
import math
import jax
import jax.numpy as jnp
from jax.experimental import pallas as pl
from jax.experimental.pallas import tpu as pltpu


_TARGET_TILE_BYTES = 4 * 1024 * 1024   # per x tile (VMEM footprint); ~4x live when double-buffered


def _round_up(a, b):
    return (a + b - 1) // b * b


def _choose_blocks(S, B, D, itemsize):
    """Pick (ts_blk, d_blk): sequence rows and embed lanes per grid step."""
    b_pad = _round_up(B, 8)        # sublane padding of the (B, D) slab in VMEM
    d_pad = _round_up(D, 128)      # lane padding
    row_bytes = b_pad * d_pad * itemsize

    # Split the embed/lane axis only when even a single-row tile is too big
    # (keeps blocks 128-multiples -> lane-dense unmasked stores).
    d_blk = D
    if row_bytes > _TARGET_TILE_BYTES and D > 128:
        n = pl.cdiv(row_bytes, _TARGET_TILE_BYTES)
        d_blk = min(D, max(128, _round_up(pl.cdiv(D, n), 128)))
        row_bytes = b_pad * _round_up(d_blk, 128) * itemsize
    # NOTE: an extremely large B with a small D could still exceed the target at
    # a 1-row tile; such shapes would additionally need a batch-axis split.

    ts_blk = max(1, min(S, _TARGET_TILE_BYTES // max(row_bytes, 1)))

    # Best-effort even step count so v7x's two TensorCores get equal work.
    # Single-tile problems stay one step (no gratuitous split on 1-core chips).
    steps = pl.cdiv(S, ts_blk)
    if steps > 1 and steps % 2 == 1:
        for n in range(steps + 1, steps + 8, 2):
            t = max(1, pl.cdiv(S, n))
            if pl.cdiv(S, t) % 2 == 0:
                ts_blk = t
                break
    return ts_blk, d_blk


# ---------------------------------------------------------------------------
# Kernels — pure bandwidth-bound adds on (ts_blk, B, d_blk) tiles
# ---------------------------------------------------------------------------
def _pe_kernel(x_ref, pe_ref, o_ref):
    # x_ref: (ts, B, D); pe_ref: (ts, 1, D) f32 — broadcast over the batch/sublane axis.
    o_ref[...] = x_ref[...] + pe_ref[...].astype(x_ref.dtype)


def _pe_time_kernel(x_ref, pe_ref, time_ref, o_ref):
    # pe_ref/time_ref: (ts, 1, D) f32; summed at 1/B of the tile, cast once, then a
    # single native-dtype add broadcast over the batch sublane axis.
    term = (pe_ref[...] + time_ref[...]).astype(x_ref.dtype)
    o_ref[...] = x_ref[...] + term


# ---------------------------------------------------------------------------
# Module-equivalent wrapper
# ---------------------------------------------------------------------------
class PositionalEncodingPallas:
    def __init__(self, d_model, dropout=0.1, max_len=5000, key=None):
        assert d_model % 2 == 0, "PyTorch reference requires even d_model"
        self.d_model = d_model
        self.max_len = max_len
        self.p_dropout = dropout  # TODO(synk): training-mode dropout mask not applied (eval semantics)

        # Dense pe buffer, built exactly like the PyTorch register_buffer and
        # streamed into the kernel (bit-exact; no in-kernel trig).
        position = jnp.arange(0, max_len, dtype=jnp.float32)[:, None]
        div_term = jnp.exp(jnp.arange(0, d_model, 2, dtype=jnp.float32)
                           * (-math.log(10000.0) / d_model))
        pe = jnp.zeros((max_len, d_model), dtype=jnp.float32)
        pe = pe.at[:, 0::2].set(jnp.sin(position * div_term))
        pe = pe.at[:, 1::2].set(jnp.cos(position * div_term))
        self.pe = pe[:, None, :]                                  # (max_len, 1, d_model)

        # W_k ~ torch.rand([1, d_model]) — matches distribution, not torch's bit values.
        if key is None:
            key = jax.random.PRNGKey(0)
        self.W_k = jax.random.uniform(key, (1, d_model), dtype=jnp.float32)

    # -------------------------------------------------------------------
    def __call__(self, x, timestamps=None):
        S, B, D = x.shape
        assert D == self.d_model and S <= self.max_len

        ts_blk, d_blk = _choose_blocks(S, B, D, x.dtype.itemsize)
        grid = (pl.cdiv(S, ts_blk), pl.cdiv(D, d_blk))

        x_spec = pl.BlockSpec((ts_blk, B, d_blk), lambda i, j: (i, 0, j))
        bcast_spec = pl.BlockSpec((ts_blk, 1, d_blk), lambda i, j: (i, 0, j))
        cparams = pltpu.CompilerParams(
            dimension_semantics=("parallel", "parallel"),
            vmem_limit_bytes=48 * 1024 * 1024,   # safe on v5e/v6e (128 MiB) and v7x (64 MiB)
        )
        out_shape = jax.ShapeDtypeStruct((S, B, D), x.dtype)

        if timestamps is None:
            out = pl.pallas_call(
                _pe_kernel,
                out_shape=out_shape,
                grid_spec=pltpu.PrefetchScalarGridSpec(
                    num_scalar_prefetch=0,
                    grid=grid,
                    in_specs=[x_spec, bcast_spec],
                    out_specs=x_spec,
                ),
                compiler_params=cparams,
            )(x, self.pe)
        else:
            # Precompute sin(ts * W_k) once over (S, 1, D) — only 1/B of the main
            # stream — so the kernel has no per-element sin polynomial on the VALU.
            time = jnp.sin(timestamps.astype(jnp.float32).reshape(S, 1, 1)
                           * self.W_k.reshape(1, 1, D))
            out = pl.pallas_call(
                _pe_time_kernel,
                out_shape=out_shape,
                grid_spec=pltpu.PrefetchScalarGridSpec(
                    num_scalar_prefetch=0,
                    grid=grid,
                    in_specs=[x_spec, bcast_spec, bcast_spec],
                    out_specs=x_spec,
                ),
                compiler_params=cparams,
            )(x, self.pe, time)

        # eval-mode dropout == identity
        return out


# ---------------------------------------------------------------------------
# Pure-JAX reference (uses the dense pe buffer, like the PyTorch module)
# ---------------------------------------------------------------------------
def _reference(mod, x, timestamps=None):
    S = x.shape[0]
    pe = mod.pe[:S]                                                      # (S, 1, D)
    if timestamps is None:
        return x + pe
    time = jnp.sin(timestamps.astype(jnp.float32)[:, None] * mod.W_k)   # (S, D)
    return x + time[:, None, :] + pe


if __name__ == "__main__":
    key = jax.random.PRNGKey(0)
    k_x, k_t, k_w, k_x2, k_t2 = jax.random.split(key, 5)

    # Small shapes consistent with the module: seq=8, batch=2, embed dim=32.
    S, B, D = 8, 2, 32
    mod = PositionalEncodingPallas(d_model=D, dropout=0.1, max_len=64, key=k_w)

    x = jax.random.normal(k_x, (S, B, D), dtype=jnp.float32)
    timestamps = jax.random.uniform(k_t, (S,), dtype=jnp.float32) * 10.0

    # Path 1: no timestamps
    out1 = jax.block_until_ready(mod(x))
    ref1 = _reference(mod, x)
    assert out1.shape == (S, B, D)
    assert jnp.allclose(out1, ref1, atol=1e-5, rtol=1e-5), "pe path mismatch"

    # Path 2: with timestamps
    out2 = jax.block_until_ready(mod(x, timestamps))
    ref2 = _reference(mod, x, timestamps)
    assert out2.shape == (S, B, D)
    assert jnp.allclose(out2, ref2, atol=1e-5, rtol=1e-5), "timestamp path mismatch"

    # Path 3: force a multi-step grid with a non-dividing boundary block
    # (exercises Pallas boundary clipping without any wrapper pad/slice).
    _saved_target = _TARGET_TILE_BYTES
    try:
        globals()["_TARGET_TILE_BYTES"] = 8 * 1024
        S3, B3, D3 = 37, 8, 128
        mod3 = PositionalEncodingPallas(d_model=D3, dropout=0.1, max_len=64, key=k_w)
        x3 = jax.random.normal(k_x2, (S3, B3, D3), dtype=jnp.float32)
        ts3 = jax.random.uniform(k_t2, (S3,), dtype=jnp.float32) * 10.0
        out3 = jax.block_until_ready(mod3(x3, ts3))
        ref3 = _reference(mod3, x3, ts3)
        assert out3.shape == (S3, B3, D3)
        assert jnp.allclose(out3, ref3, atol=1e-5, rtol=1e-5), "boundary path mismatch"
    finally:
        globals()["_TARGET_TILE_BYTES"] = _saved_target

    print("KERNEL_OK")
</pallas_src>

<mosaic_0001>
module attributes {stable_mosaic.version = 11 : i64} {
  func.func @_pe_kernel(%arg0: i32, %arg1: i32, %arg2: memref<8x2x32xf32, #tpu.memory_space<vmem>>, %arg3: memref<8x1x32xf32, #tpu.memory_space<vmem>>, %arg4: memref<8x2x32xf32, #tpu.memory_space<vmem>>) attributes {dimension_semantics = [#tpu.dimension_semantics<parallel>, #tpu.dimension_semantics<parallel>], iteration_bounds = array<i64: 1, 1>, scalar_prefetch = 0 : i64, scratch_operands = 0 : i64, tpu.core_type = #tpu.core_type<tc>, window_params = [{transform_indices = @transform_0, window_bounds = array<i64: 8, 2, 32>}, {transform_indices = @transform_1, window_bounds = array<i64: 8, 1, 32>}, {transform_indices = @transform_2, window_bounds = array<i64: 8, 2, 32>}]} {
    %c0 = arith.constant 0 : index
    %c0_0 = arith.constant 0 : index
    %c0_1 = arith.constant 0 : index
    %0 = vector.load %arg2[%c0, %c0_0, %c0_1] : memref<8x2x32xf32, #tpu.memory_space<vmem>>, vector<8x2x32xf32>
    %c0_2 = arith.constant 0 : index
    %c0_3 = arith.constant 0 : index
    %c0_4 = arith.constant 0 : index
    %1 = vector.load %arg3[%c0_2, %c0_3, %c0_4] : memref<8x1x32xf32, #tpu.memory_space<vmem>>, vector<8x1x32xf32>
    %2 = vector.broadcast %1 : vector<8x1x32xf32> to vector<8x2x32xf32>
    %3 = arith.addf %0, %2 : vector<8x2x32xf32>
    %c0_5 = arith.constant 0 : index
    %c0_6 = arith.constant 0 : index
    %c0_7 = arith.constant 0 : index
    %4 = vector.load %arg4[%c0_5, %c0_6, %c0_7] : memref<8x2x32xf32, #tpu.memory_space<vmem>>, vector<8x2x32xf32>
    tpu.vector_store %arg4[%c0_5, %c0_6, %c0_7], %3 {strides = array<i32>} : memref<8x2x32xf32, #tpu.memory_space<vmem>>, vector<8x2x32xf32>,
    return
  }
  func.func @transform_0(%arg0: i32, %arg1: i32) -> (i32, i32, i32) {
    %c0_i32 = arith.constant 0 : i32
    %c0_i32_0 = arith.constant 0 : i32
    return %arg0, %c0_i32, %arg1 : i32, i32, i32
  }
  func.func @transform_1(%arg0: i32, %arg1: i32) -> (i32, i32, i32) {
    %c0_i32 = arith.constant 0 : i32
    %c0_i32_0 = arith.constant 0 : i32
    return %arg0, %c0_i32, %arg1 : i32, i32, i32
  }
  func.func @transform_2(%arg0: i32, %arg1: i32) -> (i32, i32, i32) {
    %c0_i32 = arith.constant 0 : i32
    %c0_i32_0 = arith.constant 0 : i32
    return %arg0, %c0_i32, %arg1 : i32, i32, i32
  }
}

</mosaic_0001>

<bundles_post_ra>
// kernel: tpu_custom_call.1
= control target key start
LH: loop header
LB: loop body
LE: loop exit
PB: predicated region body
PF: predicated region fallthrough
CT: control target
= control target key end

     0   :  { %vm84_vm0 = vcmask 254976   ;;  %s230_s0 = inlined_call_operand.vmem [shape: f32[8,2,32], index: 0, kind: input, shape index: {}]   ;;  %s231_s1 = inlined_call_operand.vmem [shape: f32[64,1,32], index: 1, kind: input, shape index: {}]   ;;  %s232_s2 = inlined_call_operand.hbm [shape: f32[8,2,32], index: 2, kind: output, shape index: {}]  }
   0x1   :  { %v12_v0 = vld [vmem:[%s230_s0] sm:$0x3]  ;;  %v13_v3 = vld [vmem:[%s230_s0 + $0x2] sm:$0x3]  ;;  %v14_v5 = vld [vmem:[%s230_s0 + $0x4] sm:$0x3] }
   0x2   :  { %v109_v1 = vld [vmem:[%s231_s1] ss:$0 sm:$0xff]  ;;  %v110_v4 = vld [vmem:[%s231_s1 + $0x1] ss:$0 sm:$0xff]  ;;  %v111_v7 = vld [vmem:[%s231_s1 + $0x2] ss:$0 sm:$0xff] }
   0x3   :  { %v76_v2 = vadd.f32 %v109_v1, %v12_v0  ;;  %v77_v6 = vadd.f32 %v110_v4, %v13_v3  ;;  %v15_v8 = vld [vmem:[%s230_s0 + $0x6] sm:$0x3]  ;;  %v112_v9 = vld [vmem:[%s231_s1 + $0x3] ss:$0 sm:$0xff]  ;;  %v78_v10 = vadd.f32 %v111_v7, %v14_v5  ;;  %v16_v12 = vld [vmem:[%s230_s0 + $0x8] sm:$0x3] }
   0x4   :  { %v79_v11 = vadd.f32 %v112_v9, %v15_v8  ;;  %v113_v13 = vld [vmem:[%s231_s1 + $0x4] ss:$0 sm:$0xff]  ;;  %v17_v14 = vld [vmem:[%s230_s0 + $0xa] sm:$0x3]  ;;  %v114_v16 = vld [vmem:[%s231_s1 + $0x5] ss:$0 sm:$0xff] }
   0x5   :  { %85 = vst.msk [vmem:[#allocation2] sm:$0x3] %vm84_vm0, %v76_v2  ;;  %86 = vst.msk [vmem:[#allocation2 + $0x2] sm:$0x3] %vm84_vm0, %v77_v6  ;;  %v80_v15 = vadd.f32 %v113_v13, %v16_v12  ;;  %v18_v17 = vld [vmem:[%s230_s0 + $0xc] sm:$0x3]  ;;  %v81_v19 = vadd.f32 %v114_v16, %v17_v14 }
   0x6   :  { %v115_v18 = vld [vmem:[%s231_s1 + $0x6] ss:$0 sm:$0xff]  ;;  %87 = vst.msk [vmem:[#allocation2 + $0x4] sm:$0x3] %vm84_vm0, %v78_v10  ;;  %88 = vst.msk [vmem:[#allocation2 + $0x6] sm:$0x3] %vm84_vm0, %v79_v11 }
   0x7   :  { %v82_v20 = vadd.f32 %v115_v18, %v18_v17  ;;  %v19_v21 = vld [vmem:[%s230_s0 + $0xe] sm:$0x3]  ;;  %v116_v22 = vld [vmem:[%s231_s1 + $0x7] ss:$0 sm:$0xff] }
   0x8   :  { %7 = vsyncpa [#allocation3], 0  ;;  %89 = vst.msk [vmem:[#allocation2 + $0x8] sm:$0x3] %vm84_vm0, %v80_v15  ;;  %v83_v23 = vadd.f32 %v116_v22, %v19_v21  ;;  %s144_s13 = smov [#allocation2]  }
   0x9   :  { %s98_s14 = sshll.u32 %s144_s13, 4  ;;  %90 = vst.msk [vmem:[#allocation2 + $0xa] sm:$0x3] %vm84_vm0, %v81_v19  ;;  %91 = vst.msk [vmem:[#allocation2 + $0xc] sm:$0x3] %vm84_vm0, %v82_v20  ;;  %s99_s14 = int_to_ptr.vmem [resolvable:$true] %s98_s14 }
   0xa   :  { %92 = vst.msk [vmem:[#allocation2 + $0xe] sm:$0x3] %vm84_vm0, %v83_v23  ;;  %s120_s15 = scalar_lea.vmem %s99_s14, 256  ;;  %p125_p1 = scmp.lt.s32.totalorder %s99_s14, %s99_s14 }
   0xb   :  { %p121_p0 = scmp.ne.s32.totalorder %s99_s14, %s120_s15  ;;  %p126_p2 = scmp.lt.s32.totalorder %s120_s15, %s120_s15 }
   0xd   :  { %p127_p3 = por %p126_p2, %p125_p1 }
   0xf   :  { %p128_p4 = pnand %p127_p3, %p121_p0 }
  0x11   :  { %131 = shalt.err (!%p128_p4)
}
  0x12   :  { %s132_s16 = scalar_lea.hbm %s232_s2, 256 }
  0x13   :  { %p133_p5 = scmp.ne.s32.totalorder %s232_s2, %s132_s16  ;;  %p136_p6 = scmp.lt.u32.totalorder %s132_s16, %s232_s2 }
  0x15   :  { %p138_p7 = pnand %p136_p6, %p133_p5 }
  0x17   :  { %141 = shalt.err (!%p138_p7)
}
  0x18   :  { %s145_s21 = smov 32   ;;  %s146_s22 = smov 2  }
  0x19   :  { %104 = dma.vmem_to_hbm [thread:$0]  %s99_s14, 256, %s232_s2, [#allocation3], %s145_s21, %s145_s21, %s146_s22  }
  0x1a   :  { %142 = dma.done.wait [#allocation3], 256  }
  0x1b   :  { %143 = vsyncadd [#allocation3], 4294967040 }
  0x1c   :  { %108 = vsyncpa [#allocation3], 1 }

</bundles_post_ra>
